<compile_context>
chip_gen: v7x
topology: tpu7x:2x2x1
jax: 0.10.0
libtpu: 0.0.40
codegen_flags: <defaults>
</compile_context>

<pallas_src>
import functools
import numpy as np

import jax
import jax.numpy as jnp
from jax.experimental import pallas as pl
from jax.experimental.pallas import tpu as pltpu


def _round_up(x, m):
    return (x + m - 1) // m * m


def _cdiv(a, b):
    return (a + b - 1) // b


# ----------------------------------------------------------------------------
# Fused 3-layer MLP kernel (one row-block per grid step; weights VMEM-resident)
# ----------------------------------------------------------------------------
def _ff_decoder_kernel(x_ref, w1_ref, b1_ref, w2_ref, b2_ref, w3_ref, b3_ref,
                       o_ref, *, slope):
    # layer 1: (tm, H) @ (H, 64) + b1 -> LeakyReLU      (f32 accumulate)
    h = jnp.dot(x_ref[...], w1_ref[...], preferred_element_type=jnp.float32)
    h = h + b1_ref[...]
    h = jnp.where(h >= 0, h, slope * h)

    # layer 2: (tm, 64) @ (64, 128) + b2 -> LeakyReLU
    h = jnp.dot(h.astype(w2_ref.dtype), w2_ref[...],
                preferred_element_type=jnp.float32)
    h = h + b2_ref[...]
    h = jnp.where(h >= 0, h, slope * h)

    # layer 3: (tm, 128) @ (128, Dout_p) + b3   (no activation)
    out = jnp.dot(h.astype(w3_ref.dtype), w3_ref[...],
                  preferred_element_type=jnp.float32)
    out = out + b3_ref[...]
    o_ref[...] = out.astype(o_ref.dtype)


# ----------------------------------------------------------------------------
# One-time parameter preparation (call ONCE, outside the jitted forward)
# ----------------------------------------------------------------------------
def prepare_params(params):
    """PyTorch-Linear params (w: (out,in), b: (out,)) -> kernel layout:
    (in,out) bf16 weights, (1,N) f32 biases, output dim lane-padded to 128."""
    dout = params["w3"].shape[0]
    dout_p = _round_up(dout, 128)       # lane-dense output stores (vst, not vst.msk)

    w1 = params["w1"].T.astype(jnp.bfloat16)
    w2 = params["w2"].T.astype(jnp.bfloat16)
    w3 = params["w3"].T.astype(jnp.bfloat16)
    b1 = params["b1"].reshape(1, -1).astype(jnp.float32)
    b2 = params["b2"].reshape(1, -1).astype(jnp.float32)
    b3 = params["b3"].reshape(1, -1).astype(jnp.float32)
    if dout_p != dout:                  # only when grid_size is not a multiple of 8
        w3 = jnp.pad(w3, ((0, 0), (0, dout_p - dout)))
        b3 = jnp.pad(b3, ((0, 0), (0, dout_p - dout)))
    return dict(w1=w1, b1=b1, w2=w2, b2=b2, w3=w3, b3=b3)


# ----------------------------------------------------------------------------
# Forward
# ----------------------------------------------------------------------------
def ff_decoder_forward(x, prepped, dout, slope, out_dtype=jnp.float32,
                       use_pallas=True):
    """FFDecoder.forward.  x: (..., hidden) -> (prod(leading), dout)."""
    w1, b1 = prepped["w1"], prepped["b1"]
    w2, b2 = prepped["w2"], prepped["b2"]
    w3, b3 = prepped["w3"], prepped["b3"]
    hidden = w1.shape[0]
    dout_p = w3.shape[1]

    # `x.view(-1, out_features)` semantics; single direct cast to bf16.
    xb = x.reshape(-1, hidden).astype(jnp.bfloat16)
    M = xb.shape[0]

    if not use_pallas:                  # pure-JAX reference (same dtype path)
        h = jnp.dot(xb, w1, preferred_element_type=jnp.float32) + b1
        h = jnp.where(h >= 0, h, slope * h)
        h = jnp.dot(h.astype(jnp.bfloat16), w2,
                    preferred_element_type=jnp.float32) + b2
        h = jnp.where(h >= 0, h, slope * h)
        out = jnp.dot(h.astype(jnp.bfloat16), w3,
                      preferred_element_type=jnp.float32) + b3
        out = out.astype(out_dtype)
        return out[:, :dout] if dout_p != dout else out

    # Row (batch) tiling only: no K loop, no N grid axis.
    #  - small M: one 16-row-aligned block (bf16 vreg packs [16,128]).
    #  - large M: big tiles for HBM roofline, capped so the "parallel" axis
    #    still has >=2 balanced blocks (keeps v7x's second TC busy).
    if M <= 256:
        tm = _round_up(M, 16)
    else:
        tm = min(512, _round_up(_cdiv(M, 2), 128))
    grid = (_cdiv(M, tm),)              # partial last block handled by Pallas masking

    out = pl.pallas_call(
        functools.partial(_ff_decoder_kernel, slope=slope),
        out_shape=jax.ShapeDtypeStruct((M, dout_p), out_dtype),
        grid_spec=pltpu.PrefetchScalarGridSpec(
            num_scalar_prefetch=0,
            grid=grid,
            in_specs=[
                pl.BlockSpec((tm, hidden), lambda i: (i, 0)),        # x rows
                pl.BlockSpec((hidden, w1.shape[1]), lambda i: (0, 0)),  # W1 (full)
                pl.BlockSpec((1, b1.shape[1]), lambda i: (0, 0)),       # b1
                pl.BlockSpec((w2.shape[0], w2.shape[1]), lambda i: (0, 0)),  # W2
                pl.BlockSpec((1, b2.shape[1]), lambda i: (0, 0)),       # b2
                pl.BlockSpec((w3.shape[0], dout_p), lambda i: (0, 0)),  # W3
                pl.BlockSpec((1, dout_p), lambda i: (0, 0)),            # b3
            ],
            out_specs=pl.BlockSpec((tm, dout_p), lambda i: (i, 0)),
        ),
        compiler_params=pltpu.CompilerParams(
            dimension_semantics=("parallel",)),
    )(xb, w1, b1, w2, b2, w3, b3)

    return out[:, :dout] if dout_p != dout else out


# ----------------------------------------------------------------------------
if __name__ == "__main__":
    grid_size = 8
    hidden_size = 32
    slope = 0.1                 # config.leaky_negative_slope
    batch = 2
    dout = 2 * grid_size ** 2   # 128

    key = jax.random.PRNGKey(0)
    ks = jax.random.split(key, 8)
    nrm = lambda kk, shape, s=0.1: s * jax.random.normal(kk, shape,
                                                         dtype=jnp.float32)

    # PyTorch nn.Linear weight shapes: (out_features, in_features)
    params = dict(
        w1=nrm(ks[0], (64, hidden_size)),  b1=nrm(ks[1], (64,)),
        w2=nrm(ks[2], (128, 64)),          b2=nrm(ks[3], (128,)),
        w3=nrm(ks[4], (dout, 128)),        b3=nrm(ks[5], (dout,)),
    )

    # One-time param prep, hoisted out of the jitted forward.
    prepped = jax.tree_util.tree_map(jax.block_until_ready,
                                     prepare_params(params))

    fwd = jax.jit(functools.partial(ff_decoder_forward, prepped=prepped,
                                    dout=dout, slope=slope))

    # small input consistent with the module: (batch, hidden_size)
    x = jax.random.normal(ks[6], (batch, hidden_size), dtype=jnp.float32)
    out = fwd(x)
    jax.block_until_ready(out)
    ref = ff_decoder_forward(x, prepped, dout, slope, use_pallas=False)
    assert out.shape == (batch, dout)
    assert np.isfinite(np.asarray(out)).all()
    assert np.allclose(np.asarray(out), np.asarray(ref), rtol=1e-2, atol=1e-3)

    # Multi-block parallel M-grid with an uneven last block + view(-1, ...)
    # flattening of leading dims (M = 300).
    xb_in = jax.random.normal(ks[7], (3, 100, hidden_size), dtype=jnp.float32)
    out_b = fwd(xb_in)
    jax.block_until_ready(out_b)
    ref_b = ff_decoder_forward(xb_in, prepped, dout, slope, use_pallas=False)
    assert out_b.shape == (300, dout)
    assert np.isfinite(np.asarray(out_b)).all()
    assert np.allclose(np.asarray(out_b), np.asarray(ref_b),
                       rtol=1e-2, atol=1e-3)

    # Optional bf16 output path (halves write-dominated HBM traffic).
    fwd_bf16 = jax.jit(functools.partial(ff_decoder_forward, prepped=prepped,
                                         dout=dout, slope=slope,
                                         out_dtype=jnp.bfloat16))
    out_bf16 = fwd_bf16(xb_in)
    jax.block_until_ready(out_bf16)
    assert out_bf16.dtype == jnp.bfloat16
    assert np.allclose(np.asarray(out_bf16.astype(jnp.float32)),
                       np.asarray(ref_b), rtol=3e-2, atol=5e-3)

    print("KERNEL_OK")
</pallas_src>

<mosaic_0001>
module attributes {stable_mosaic.version = 11 : i64} {
  func.func @_ff_decoder_kernel(%arg0: i32, %arg1: memref<16x32xbf16, #tpu.memory_space<vmem>>, %arg2: memref<32x64xbf16, #tpu.memory_space<vmem>>, %arg3: memref<1x64xf32, #tpu.memory_space<vmem>>, %arg4: memref<64x128xbf16, #tpu.memory_space<vmem>>, %arg5: memref<1x128xf32, #tpu.memory_space<vmem>>, %arg6: memref<128x128xbf16, #tpu.memory_space<vmem>>, %arg7: memref<1x128xf32, #tpu.memory_space<vmem>>, %arg8: memref<16x128xf32, #tpu.memory_space<vmem>>) attributes {dimension_semantics = [#tpu.dimension_semantics<parallel>], iteration_bounds = array<i64: 1>, scalar_prefetch = 0 : i64, scratch_operands = 0 : i64, tpu.core_type = #tpu.core_type<tc>, window_params = [{transform_indices = @transform_0, window_bounds = array<i64: 16, 32>}, {pipeline_mode = #tpu.pipeline_mode<synchronous>, transform_indices = @transform_1, window_bounds = array<i64: 32, 64>}, {pipeline_mode = #tpu.pipeline_mode<synchronous>, transform_indices = @transform_2, window_bounds = array<i64: 1, 64>}, {pipeline_mode = #tpu.pipeline_mode<synchronous>, transform_indices = @transform_3, window_bounds = array<i64: 64, 128>}, {pipeline_mode = #tpu.pipeline_mode<synchronous>, transform_indices = @transform_4, window_bounds = array<i64: 1, 128>}, {pipeline_mode = #tpu.pipeline_mode<synchronous>, transform_indices = @transform_5, window_bounds = array<i64: 128, 128>}, {pipeline_mode = #tpu.pipeline_mode<synchronous>, transform_indices = @transform_6, window_bounds = array<i64: 1, 128>}, {transform_indices = @transform_7, window_bounds = array<i64: 16, 128>}]} {
    %c0 = arith.constant 0 : index
    %c0_0 = arith.constant 0 : index
    %0 = vector.load %arg1[%c0, %c0_0] : memref<16x32xbf16, #tpu.memory_space<vmem>>, vector<16x32xbf16>
    %c0_1 = arith.constant 0 : index
    %c0_2 = arith.constant 0 : index
    %1 = vector.load %arg2[%c0_1, %c0_2] : memref<32x64xbf16, #tpu.memory_space<vmem>>, vector<32x64xbf16>
    %cst = arith.constant dense<0.000000e+00> : vector<16x64xf32>
    %2 = tpu.matmul %0, %1, %cst {dimension_numbers = #tpu.dot_dimension_numbers<[1], [0], [0], [1], [0, 0, 1, 1], [], []>} : vector<16x32xbf16>, vector<32x64xbf16>, vector<16x64xf32> -> vector<16x64xf32>
    %c0_3 = arith.constant 0 : index
    %c0_4 = arith.constant 0 : index
    %3 = vector.load %arg3[%c0_3, %c0_4] : memref<1x64xf32, #tpu.memory_space<vmem>>, vector<1x64xf32>
    %4 = vector.broadcast %3 : vector<1x64xf32> to vector<16x64xf32>
    %5 = arith.addf %2, %4 : vector<16x64xf32>
    %cst_5 = arith.constant 0.000000e+00 : f32
    %6 = vector.broadcast %cst_5 : f32 to vector<16x64xf32>
    %7 = arith.cmpf oge, %5, %6 : vector<16x64xf32>
    %cst_6 = arith.constant 1.000000e-01 : f32
    %8 = vector.broadcast %cst_6 : f32 to vector<16x64xf32>
    %9 = arith.mulf %8, %5 : vector<16x64xf32>
    %10 = arith.select %7, %5, %9 : vector<16x64xi1>, vector<16x64xf32>
    %11 = arith.truncf %10 : vector<16x64xf32> to vector<16x64xbf16>
    %c0_7 = arith.constant 0 : index
    %c0_8 = arith.constant 0 : index
    %12 = vector.load %arg4[%c0_7, %c0_8] : memref<64x128xbf16, #tpu.memory_space<vmem>>, vector<64x128xbf16>
    %cst_9 = arith.constant dense<0.000000e+00> : vector<16x128xf32>
    %13 = tpu.matmul %11, %12, %cst_9 {dimension_numbers = #tpu.dot_dimension_numbers<[1], [0], [0], [1], [0, 0, 1, 1], [], []>} : vector<16x64xbf16>, vector<64x128xbf16>, vector<16x128xf32> -> vector<16x128xf32>
    %c0_10 = arith.constant 0 : index
    %c0_11 = arith.constant 0 : index
    %14 = vector.load %arg5[%c0_10, %c0_11] : memref<1x128xf32, #tpu.memory_space<vmem>>, vector<1x128xf32>
    %15 = vector.broadcast %14 : vector<1x128xf32> to vector<16x128xf32>
    %16 = arith.addf %13, %15 : vector<16x128xf32>
    %cst_12 = arith.constant 0.000000e+00 : f32
    %17 = vector.broadcast %cst_12 : f32 to vector<16x128xf32>
    %18 = arith.cmpf oge, %16, %17 : vector<16x128xf32>
    %cst_13 = arith.constant 1.000000e-01 : f32
    %19 = vector.broadcast %cst_13 : f32 to vector<16x128xf32>
    %20 = arith.mulf %19, %16 : vector<16x128xf32>
    %21 = arith.select %18, %16, %20 : vector<16x128xi1>, vector<16x128xf32>
    %22 = arith.truncf %21 : vector<16x128xf32> to vector<16x128xbf16>
    %c0_14 = arith.constant 0 : index
    %c0_15 = arith.constant 0 : index
    %23 = vector.load %arg6[%c0_14, %c0_15] : memref<128x128xbf16, #tpu.memory_space<vmem>>, vector<128x128xbf16>
    %cst_16 = arith.constant dense<0.000000e+00> : vector<16x128xf32>
    %24 = tpu.matmul %22, %23, %cst_16 {dimension_numbers = #tpu.dot_dimension_numbers<[1], [0], [0], [1], [0, 0, 1, 1], [], []>} : vector<16x128xbf16>, vector<128x128xbf16>, vector<16x128xf32> -> vector<16x128xf32>
    %c0_17 = arith.constant 0 : index
    %c0_18 = arith.constant 0 : index
    %25 = vector.load %arg7[%c0_17, %c0_18] : memref<1x128xf32, #tpu.memory_space<vmem>>, vector<1x128xf32>
    %26 = vector.broadcast %25 : vector<1x128xf32> to vector<16x128xf32>
    %27 = arith.addf %24, %26 : vector<16x128xf32>
    %c0_19 = arith.constant 0 : index
    %c0_20 = arith.constant 0 : index
    %28 = vector.load %arg8[%c0_19, %c0_20] : memref<16x128xf32, #tpu.memory_space<vmem>>, vector<16x128xf32>
    tpu.vector_store %arg8[%c0_19, %c0_20], %27 {strides = array<i32>} : memref<16x128xf32, #tpu.memory_space<vmem>>, vector<16x128xf32>,
    return
  }
  func.func @transform_0(%arg0: i32) -> (i32, i32) {
    %c0_i32 = arith.constant 0 : i32
    %c0_i32_0 = arith.constant 0 : i32
    return %arg0, %c0_i32 : i32, i32
  }
  func.func @transform_1(%arg0: i32) -> (i32, i32) {
    %c0_i32 = arith.constant 0 : i32
    %c0_i32_0 = arith.constant 0 : i32
    %c0_i32_1 = arith.constant 0 : i32
    return %c0_i32, %c0_i32_0 : i32, i32
  }
  func.func @transform_2(%arg0: i32) -> (i32, i32) {
    %c0_i32 = arith.constant 0 : i32
    %c0_i32_0 = arith.constant 0 : i32
    %c0_i32_1 = arith.constant 0 : i32
    return %c0_i32, %c0_i32_0 : i32, i32
  }
  func.func @transform_3(%arg0: i32) -> (i32, i32) {
    %c0_i32 = arith.constant 0 : i32
    %c0_i32_0 = arith.constant 0 : i32
    %c0_i32_1 = arith.constant 0 : i32
    return %c0_i32, %c0_i32_0 : i32, i32
  }
  func.func @transform_4(%arg0: i32) -> (i32, i32) {
    %c0_i32 = arith.constant 0 : i32
    %c0_i32_0 = arith.constant 0 : i32
    %c0_i32_1 = arith.constant 0 : i32
    return %c0_i32, %c0_i32_0 : i32, i32
  }
  func.func @transform_5(%arg0: i32) -> (i32, i32) {
    %c0_i32 = arith.constant 0 : i32
    %c0_i32_0 = arith.constant 0 : i32
    %c0_i32_1 = arith.constant 0 : i32
    return %c0_i32, %c0_i32_0 : i32, i32
  }
  func.func @transform_6(%arg0: i32) -> (i32, i32) {
    %c0_i32 = arith.constant 0 : i32
    %c0_i32_0 = arith.constant 0 : i32
    %c0_i32_1 = arith.constant 0 : i32
    return %c0_i32, %c0_i32_0 : i32, i32
  }
  func.func @transform_7(%arg0: i32) -> (i32, i32) {
    %c0_i32 = arith.constant 0 : i32
    %c0_i32_0 = arith.constant 0 : i32
    return %arg0, %c0_i32 : i32, i32
  }
}

</mosaic_0001>

<bundles_post_ra>
// kernel: ff_decoder_forward.1
= control target key start
LH: loop header
LB: loop body
LE: loop exit
PB: predicated region body
PF: predicated region fallthrough
CT: control target
= control target key end

     0   :  { %12 = vsyncpa [#allocation3], 0  ;;  %s793_s0 = inlined_call_operand.vmem [shape: bf16[2,32], index: 0, kind: input, shape index: {}]   ;;  %s794_s1 = inlined_call_operand.hbm [shape: bf16[32,64], index: 1, kind: input, shape index: {}]   ;;  %s795_s2 = inlined_call_operand.hbm [shape: f32[1,64], index: 2, kind: input, shape index: {}]   ;;  %s796_s3 = inlined_call_operand.vmem [shape: bf16[64,128], index: 3, kind: input, shape index: {}]   ;;  %s797_s4 = inlined_call_operand.vmem [shape: f32[1,128], index: 4, kind: input, shape index: {}]   ;;  %s798_s5 = inlined_call_operand.hbm [shape: bf16[128,128], index: 5, kind: input, shape index: {}]   ;;  %s799_s6 = inlined_call_operand.vmem [shape: f32[1,128], index: 6, kind: input, shape index: {}]   ;;  %s800_s7 = inlined_call_operand.hbm [shape: f32[2,128], index: 7, kind: output, shape index: {}]  }
   0x1   :  { %13 = vsyncpa [#allocation6], 0 }
   0x2   :  { %14 = vsyncpa [#allocation4], 0  ;;  %s625_s24 = smov [#allocation5]   ;;  %s626_s26 = smov [#allocation2]  }
   0x3   :  { %s35_s25 = sshll.u32 %s625_s24, 4  ;;  %s22_s27 = sshll.u32 %s626_s26, 4  ;;  %s36_s25 = int_to_ptr.vmem [resolvable:$true] %s35_s25  ;;  %s676_s27 = int_to_ptr.vmem [resolvable:$true] %s22_s27 }
   0x4   :  { %s531_s30 = scalar_lea.hbm %s795_s2, 16 }
   0x5   :  { %p532_p0 = scmp.ne.s32.totalorder %s795_s2, %s531_s30  ;;  %p535_p1 = scmp.lt.u32.totalorder %s531_s30, %s795_s2 }
   0x7   :  { %p537_p2 = pnand %p535_p1, %p532_p0 }
   0x9   :  { %540 = shalt.err (!%p537_p2)
}
   0xa   :  { %s541_s12 = scalar_lea.vmem %s36_s25, 16  ;;  %s545_s13 = scalar_lea.vmem %s36_s25, 32 }
   0xb   :  { %p542_p3 = scmp.ne.s32.totalorder %s36_s25, %s541_s12  ;;  %p546_p4 = scmp.lt.s32.totalorder %s36_s25, %s36_s25 }
   0xc   :  { %p547_p5 = scmp.lt.s32.totalorder %s545_s13, %s541_s12 }
   0xe   :  { %p548_p6 = por %p547_p5, %p546_p4 }
  0x10   :  { %p549_p7 = pnand %p548_p6, %p542_p3 }
  0x12   :  { %552 = shalt.err (!%p549_p7)
}
  0x13   :  { %38 = dma.hbm_to_vmem [thread:$0]  %s795_s2, 16, %s36_s25, [#allocation6]  }
  0x14   :  { %s553_s18 = scalar_lea.hbm %s794_s1, 256 }
  0x15   :  { %p554_p8 = scmp.ne.s32.totalorder %s794_s1, %s553_s18  ;;  %p557_p9 = scmp.lt.u32.totalorder %s553_s18, %s794_s1 }
  0x17   :  { %p559_p10 = pnand %p557_p9, %p554_p8 }
  0x19   :  { %562 = shalt.err (!%p559_p10)
}
  0x1a   :  { %s563_s23 = scalar_lea.vmem %s676_s27, 256  ;;  %p568_p12 = scmp.lt.s32.totalorder %s676_s27, %s676_s27 }
  0x1b   :  { %p564_p11 = scmp.ne.s32.totalorder %s676_s27, %s563_s23  ;;  %p569_p13 = scmp.lt.s32.totalorder %s563_s23, %s563_s23 }
  0x1d   :  { %p570_p0 = por %p569_p13, %p568_p12 }
  0x1f   :  { %p571_p1 = pnand %p570_p0, %p564_p11 }
  0x21   :  { %574 = shalt.err (!%p571_p1)
}
  0x22   :  { %s627_s2 = smov 64   ;;  %s628_s24 = smov 4  }
  0x23   :  { %28 = dma.hbm_to_vmem [thread:$0]  %s794_s1, 256, %s676_s27, [#allocation3], %s627_s2, %s627_s2, %s628_s24  }
  0x24   :  { %s629_s28 = smov [#allocation7]   ;;  %s575_s9 = scalar_lea.hbm %s798_s5, 1024 }
  0x25   :  { %s48_s29 = sshll.u32 %s629_s28, 4  ;;  %p576_p2 = scmp.ne.s32.totalorder %s798_s5, %s575_s9  ;;  %s49_s29 = int_to_ptr.vmem [resolvable:$true] %s48_s29 }
  0x26   :  { %p579_p3 = scmp.lt.u32.totalorder %s575_s9, %s798_s5 }
  0x28   :  { %p581_p4 = pnand %p579_p3, %p576_p2 }
  0x2a   :  { %584 = shalt.err (!%p581_p4)
}
  0x2b   :  { %s585_s14 = scalar_lea.vmem %s49_s29, 1024  ;;  %p590_p6 = scmp.lt.s32.totalorder %s49_s29, %s49_s29 }
  0x2c   :  { %p586_p5 = scmp.ne.s32.totalorder %s49_s29, %s585_s14  ;;  %p591_p7 = scmp.lt.s32.totalorder %s585_s14, %s585_s14 }
  0x2e   :  { %p592_p8 = por %p591_p7, %p590_p6 }
  0x30   :  { %p593_p9 = pnand %p592_p8, %p586_p5 }
  0x32   :  { %596 = shalt.err (!%p593_p9)
}
  0x33   :  { %54 = dma.hbm_to_vmem [thread:$0]  %s798_s5, 1024, %s49_s29, [#allocation6], %s627_s2, %s627_s2, %s628_s24  }
  0x34   :  { %619 = dma.done.wait [#allocation3], 256  }
  0x35   :  { %620 = vsyncadd [#allocation3], 4294967040 }
  0x36   :  { %621 = dma.done.wait [#allocation6], 1040  }
  0x37   :  { %622 = vsyncadd [#allocation6], 4294966256  ;;  %v101_v0 = vlaneseq  ;;  %v630_v1 = vmov 0.0   ;;  %vm631_vm0 = vmmov 0   ;;  %v632_v2 = vmov 1966171168  }
  0x38   :  { %466 = vmatprep.subr.bf16.mxu1 %v630_v1  ;;  %470 = vmatprep.mubr.msk.bf16.mxu1 %vm631_vm0, %v630_v1  ;;  %v99_v3 = vunpack.c.l.s4 %v632_v2  ;;  %v517_v6 = vld [vmem:[#allocation2] sm:$0xff]   ;;  %v518_v7 = vld [vmem:[#allocation2 + $0x8] sm:$0xff]   ;;  %vm155_vm1 = vcmask 261120   ;;  %v521_v32 = vld [vmem:[%s796_s3 + $0x10] sm:$0xff]   ;;  %vm246_vm4 = vcmask 523264  }
  0x39   :  { %486 = vmatprep.subr.bf16.mxu0 %v630_v1  ;;  %502 = vmatprep.mubr.msk.bf16.mxu0 %vm631_vm0, %v630_v1  ;;  %v102_v5 = vshrl.u32 %v101_v0, 7  ;;  %v67_v9 = vld [vmem:[%s793_s0] sm:$0x1]  ;;  %v68_v10 = vld [vmem:[%s793_s0 + $0x1] sm:$0x1]  ;;  %v520_v31 = vld [vmem:[%s796_s3 + $0x8] sm:$0xff]  }
  0x3a   :  { %v100_v4 = vunpack.c.0.s8 %v99_v3  ;;  %467 = vmatpush3.bf16.msra.mxu1 %v517_v6  ;;  %v69_v11 = vld [vmem:[%s793_s0 + $0x2] sm:$0x1]  ;;  %v70_v12 = vld [vmem:[%s793_s0 + $0x3] sm:$0x1]  ;;  %v71_v13 = vld [vmem:[%s793_s0 + $0x4] sm:$0x1]  ;;  %v94_v15 = vcombine.low %v67_v9, %v68_v10 }
  0x3b   :  { %468 = vmatprep.subr.bf16.mxu1 %v630_v1  ;;  %v72_v14 = vld [vmem:[%s793_s0 + $0x5] sm:$0x1]  ;;  %v73_v16 = vld [vmem:[%s793_s0 + $0x6] sm:$0x1]  ;;  %v74_v17 = vld [vmem:[%s793_s0 + $0x7] sm:$0x1]  ;;  %v95_v18 = vcombine.low %v69_v11, %v70_v12 }
  0x3c   :  { %v103_v8 = vsub.s32 %v100_v4, %v102_v5  ;;  %v96_v19 = vcombine.low %v71_v13, %v72_v14  ;;  %v97_v20 = vcombine.low %v73_v16, %v74_v17  ;;  %v519_v28 = vld [vmem:[%s796_s3] sm:$0xff]   ;;  %v522_v33 = vld [vmem:[%s796_s3 + $0x18] sm:$0xff]   ;;  %v526_v37 = vld [vmem:[#allocation7 + $0x18] sm:$0xff]  }
  0x3d   :  { %v523_v34 = vld [vmem:[#allocation7] sm:$0xff]   ;;  %v524_v35 = vld [vmem:[#allocation7 + $0x8] sm:$0xff]   ;;  %v525_v36 = vld [vmem:[#allocation7 + $0x10] sm:$0xff]  }
  0x3e   :  { %v104_v21 = vrot.slane %v94_v15, %v103_v8  ;;  %469 = vmatpush3.bf16.msra.mxu1 %v518_v7  ;;  %v111_v22 = vrot.slane %v95_v18, %v103_v8  ;;  %v118_v23 = vrot.slane %v96_v19, %v103_v8  ;;  %v125_v24 = vrot.slane %v97_v20, %v103_v8  ;;  %v527_v38 = vld [vmem:[#allocation7 + $0x20] sm:$0xff]   ;;  %v528_v39 = vld [vmem:[#allocation7 + $0x28] sm:$0xff]   ;;  %v430_v40 = vld [vmem:[#allocation5] ss:$0 sm:$0xff] }
  0x3f   :  { %474 = vmatprep.subr.bf16.mxu1 %v630_v1  ;;  %487 = vmatpush3.bf16.msra.mxu0 %v523_v34  ;;  %v529_v52 = vld [vmem:[#allocation7 + $0x30] sm:$0xff]   ;;  %v530_v53 = vld [vmem:[#allocation7 + $0x38] sm:$0xff]   ;;  %v434_v54 = vld [vmem:[%s797_s4] ss:$0 sm:$0xff] }
  0x40   :  { %v126_v25 = vcombine.low %v104_v21, %v111_v22  ;;  %v127_v26 = vcombine.low %v118_v23, %v125_v24  ;;  %488 = vmatprep.subr.bf16.mxu0 %v630_v1 }
  0x42   :  { %v134_v27 = vrot.slane %v126_v25, %v103_v8  ;;  %v141_v29 = vrot.slane %v127_v26, %v103_v8 }
  0x43   :  { %489 = vmatpush3.bf16.msra.mxu0 %v524_v35 }
  0x44   :  { %v142_v30 = vcombine.low %v134_v27, %v141_v29  ;;  %490 = vmatprep.subr.bf16.mxu0 %v630_v1 }
  0x46   :  { %471 = vmatmul.mubr.msk.bf16.vlgmr.msra.gmra.mrb[0].mxu1 %vm155_vm1, %v142_v30 }
  0x47   :  { %475 = vmatpush3.bf16.msra.mxu1 %v519_v28  ;;  %482 = vmatprep.mubr.msk.bf16.mxu1 %vm631_vm0, %v630_v1 }
  0x48   :  { %476 = vmatprep.subr.bf16.mxu1 %v630_v1  ;;  %491 = vmatpush3.bf16.msra.mxu0 %v525_v36 }
  0x49   :  { %492 = vmatprep.subr.bf16.mxu0 %v630_v1 }
  0x4b   :  { %477 = vmatpush3.bf16.msra.mxu1 %v520_v31 }
  0x4c   :  { %478 = vmatprep.subr.bf16.mxu1 %v630_v1  ;;  %493 = vmatpush3.bf16.msra.mxu0 %v526_v37 }
  0x4d   :  { %494 = vmatprep.subr.bf16.mxu0 %v630_v1 }
  0x4f   :  { %479 = vmatpush3.bf16.msra.mxu1 %v521_v32 }
  0x50   :  { %480 = vmatprep.subr.bf16.mxu1 %v630_v1  ;;  %495 = vmatpush3.bf16.msra.mxu0 %v527_v38 }
  0x51   :  { %496 = vmatprep.subr.bf16.mxu0 %v630_v1 }
  0x53   :  { %481 = vmatpush3.bf16.msra.mxu1 %v522_v33 }
  0x54   :  { %497 = vmatpush3.bf16.msra.mxu0 %v528_v39 }
  0x55   :  { %498 = vmatprep.subr.bf16.mxu0 %v630_v1 }
  0x58   :  { %499 = vmatpush3.bf16.msra.mxu0 %v529_v52 }
  0x59   :  { %500 = vmatprep.subr.bf16.mxu0 %v630_v1  ;;  %v440_v1 = vld [vmem:[%s799_s6] ss:$0 sm:$0xff] }
  0x5c   :  { %501 = vmatpush3.bf16.msra.mxu0 %v530_v53 }
 0x119   :  { %v193_v41 = vpop.f32.mrb[0].mxu1 }
 0x11a   :  { %v194_v42 = vadd.f32 %v430_v40, %v193_v41  ;;  %v472_v43 = vpop.f32.mrb[1].mxu1 }
 0x11b   :  { %v196_v44 = vpop.f32.mrb[2].mxu1 }
 0x11c   :  { %v202_v45 = vmul.f32 0.1, %v194_v42  ;;  %v197_v46 = vadd.f32 %v430_v40, %v196_v44  ;;  %v473_v47 = vpop.f32.mrb[3].mxu1  ;;  %vm200_vm2 = vcmp.ge.f32.partialorder %v194_v42, 0.0 }
 0x11e   :  { %vm201_vm3 = vcmp.ge.f32.partialorder %v197_v46, 0.0  ;;  %v203_v48 = vmul.f32 0.1, %v197_v46  ;;  %v204_v49 = vsel %vm200_vm2, %v194_v42, %v202_v45 }
 0x120   :  { %v205_v50 = vsel %vm201_vm3, %v197_v46, %v203_v48 }
 0x121   :  { %v206_v51 = vpack.c.bf16 %v205_v50, %v204_v49 }
 0x123   :  { %483 = vmatmul.mubr.msk.bf16.vlgmr.msra.gmra.mrb[4].mxu1 %vm246_vm4, %v206_v51 }
 0x1f6   :  { %v284_v55 = vpop.f32.mrb[4].mxu1 }
 0x1f7   :  { %v285_v56 = vadd.f32 %v434_v54, %v284_v55  ;;  %v484_v57 = vpop.f32.mrb[5].mxu1 }
 0x1f8   :  { %v287_v58 = vpop.f32.mrb[6].mxu1 }
 0x1f9   :  { %v293_v59 = vmul.f32 0.1, %v285_v56  ;;  %v288_v60 = vadd.f32 %v434_v54, %v287_v58  ;;  %v485_v61 = vpop.f32.mrb[7].mxu1  ;;  %vm291_vm5 = vcmp.ge.f32.partialorder %v285_v56, 0.0 }
 0x1fb   :  { %vm292_vm6 = vcmp.ge.f32.partialorder %v288_v60, 0.0  ;;  %v294_v62 = vmul.f32 0.1, %v288_v60  ;;  %v295_v63 = vsel %vm291_vm5, %v285_v56, %v293_v59 }
 0x1fd   :  { %v296_v0 = vsel %vm292_vm6, %v288_v60, %v294_v62 }
 0x1fe   :  { %v297_v2 = vpack.c.bf16 %v296_v0, %v295_v63 }
 0x200   :  { %503 = vmatmul.mubr.bf16.vlgmr.msra.gmra.mrb[0].mxu0 %v297_v2 }
 0x2d3   :  { %v403_v3 = vpop.f32.mrb[0].mxu0 }
 0x2d4   :  { %v404_v4 = vadd.f32 %v440_v1, %v403_v3  ;;  %v504_v5 = vpop.f32.mrb[1].mxu0 }
 0x2d5   :  { %v406_v6 = vpop.f32.mrb[2].mxu0 }
 0x2d6   :  { %410 = vst [vmem:[#allocation8] sm:$0xff] %v404_v4  ;;  %v407_v7 = vadd.f32 %v440_v1, %v406_v6  ;;  %v505_v8 = vpop.f32.mrb[3].mxu0 }
 0x2d8   :  { %411 = vst [vmem:[#allocation8 + $0x8] sm:$0xff] %v407_v7 }
 0x2d9   :  { %416 = vsyncadd [#allocation4], 224  ;;  %s633_s4 = smov [#allocation8]  }
 0x2da   :  { %s417_s5 = sshll.u32 %s633_s4, 4  ;;  %s418_s5 = int_to_ptr.vmem [resolvable:$true] %s417_s5 }
 0x2db   :  { %s597_s15 = scalar_lea.vmem %s418_s5, 32  ;;  %s601_s16 = scalar_lea.vmem %s418_s5, 256 }
 0x2dc   :  { %p598_p10 = scmp.ne.s32.totalorder %s418_s5, %s597_s15  ;;  %p602_p11 = scmp.lt.s32.totalorder %s418_s5, %s418_s5 }
 0x2dd   :  { %p603_p12 = scmp.lt.s32.totalorder %s601_s16, %s597_s15 }
 0x2df   :  { %p604_p13 = por %p603_p12, %p602_p11 }
 0x2e1   :  { %p605_p0 = pnand %p604_p13, %p598_p10 }
 0x2e3   :  { %608 = shalt.err (!%p605_p0)
}
 0x2e4   :  { %s609_s18 = scalar_lea.hbm %s800_s7, 32 }
 0x2e5   :  { %p610_p1 = scmp.ne.s32.totalorder %s800_s7, %s609_s18  ;;  %p613_p2 = scmp.lt.u32.totalorder %s609_s18, %s800_s7 }
 0x2e7   :  { %p615_p3 = pnand %p613_p2, %p610_p1 }
 0x2e9   :  { %618 = shalt.err (!%p615_p3)
}
 0x2ea   :  { %s634_s23 = smov 32   ;;  %s635_s2 = smov 2  }
 0x2eb   :  { %423 = dma.vmem_to_hbm [thread:$0]  %s418_s5, 32, %s800_s7, [#allocation4], %s634_s23, %s634_s23, %s635_s2  }
 0x2ec   :  { %623 = dma.done.wait [#allocation4], 256  }
 0x2ed   :  { %624 = vsyncadd [#allocation4], 4294967040 }
 0x2ee   :  { %427 = vsyncpa [#allocation3], 1 }
 0x2ef   :  { %428 = vsyncpa [#allocation6], 1 }
 0x2f0   :  { %429 = vsyncpa [#allocation4], 1 }

</bundles_post_ra>
